<compile_context>
chip_gen: v7x
topology: tpu7x:2x2x1
jax: 0.10.0
libtpu: 0.0.40
codegen_flags: <defaults>
</compile_context>

<pallas_src>
import functools
import math

import jax
import jax.numpy as jnp
from jax.experimental import pallas as pl
from jax.experimental.pallas import tpu as pltpu


def _round_up(x, m):
    return ((x + m - 1) // m) * m


# ---------------------------------------------------------------------------
# Prologue: per-head weighting + row L2 normalization, packed along K = H*D.
# ---------------------------------------------------------------------------
def _normalize_pack_kernel(x_ref, w_ref, o_ref, *, scale):
    # x_ref: (tr, D), w_ref: (H, D), o_ref: (tr, K_pad)
    tr, d = x_ref.shape
    h_heads = w_ref.shape[0]
    k_pad = o_ref.shape[1]

    x = x_ref[...]
    w = w_ref[...]

    # Zero the padded tail of the contraction axis so it contributes nothing
    # to the fused matmul.
    if k_pad > h_heads * d:
        o_ref[:, h_heads * d:] = jnp.zeros((tr, k_pad - h_heads * d), jnp.float32)

    for h in range(h_heads):
        wx = x * w[h:h + 1, :]                                  # (tr, D)
        sumsq = jnp.sum(wx * wx, axis=1, keepdims=True)         # (tr, 1)
        # clamp(||wx||, 1e-8) divide  ==  multiply by min(rsqrt(sumsq), 1e8)
        inv = jnp.minimum(jax.lax.rsqrt(sumsq), 1e8) * scale    # EUP rsqrt
        o_ref[:, h * d:(h + 1) * d] = wx * inv


def _normalize_pack(x, weights, k_pad, *, scale, row_tile):
    n, d = x.shape
    h = weights.shape[0]
    kernel = functools.partial(_normalize_pack_kernel, scale=float(scale))
    return pl.pallas_call(
        kernel,
        out_shape=jax.ShapeDtypeStruct((n, k_pad), jnp.float32),
        grid_spec=pltpu.PrefetchScalarGridSpec(
            num_scalar_prefetch=0,
            grid=(n // row_tile,),
            in_specs=[
                pl.BlockSpec((row_tile, d), lambda i: (i, 0)),
                pl.BlockSpec((h, d), lambda i: (0, 0)),
            ],
            out_specs=pl.BlockSpec((row_tile, k_pad), lambda i: (i, 0)),
        ),
        compiler_params=pltpu.CompilerParams(
            dimension_semantics=("parallel",)),
    )(x, weights)


# ---------------------------------------------------------------------------
# Main kernel: tiled accumulating matmul over K = H*D + threshold epilogue.
# ---------------------------------------------------------------------------
def _cosine_matmul_kernel(a_ref, b_ref, o_ref, *, threshold):
    k = pl.program_id(2)

    # Contract the last dim of both operands (no explicit .T materialized).
    part = jax.lax.dot_general(
        a_ref[...], b_ref[...],
        dimension_numbers=(((1,), (1,)), ((), ())),
        preferred_element_type=jnp.float32)

    @pl.when(k == 0)
    def _():
        o_ref[...] = part            # write directly; no zero-init pass

    @pl.when(k > 0)
    def _():
        o_ref[...] += part           # output block is resident across k

    @pl.when(k == pl.num_programs(2) - 1)
    def _():
        s = o_ref[...]               # already averaged (1/H folded into A)
        o_ref[...] = jnp.where(s < threshold, jnp.zeros_like(s), s)


def graph_generator_forward(left_h, right_h, weights, threshold=0.1):
    """JAX/Pallas equivalent of GraphGenerator.forward.

    left_h:  [L, D] f32
    right_h: [R, D] f32
    weights: [H, D] f32  (one MetricCalcLayer [1, D] weight per head)
    """
    L, D = left_h.shape
    R, _ = right_h.shape
    H = weights.shape[0]
    K = H * D

    # Glue: left_h[zero_lines, :] += 1e-8 (done functionally).
    row_sum = jnp.sum(left_h, axis=1, keepdims=True)
    left_fixed = left_h + jnp.where(row_sum == 0.0, 1e-8, 0.0).astype(left_h.dtype)

    # Tile plan: MXU/lane-aligned tiles, zero padding stripped afterwards.
    tm = min(256, _round_up(L, 8))
    tn = min(256, _round_up(R, 128))     # lane-dense output stores
    tk = min(512, _round_up(K, 128))
    l_pad = _round_up(L, tm)
    r_pad = _round_up(R, tn)
    k_pad = _round_up(K, tk)

    left_p = jnp.pad(left_fixed.astype(jnp.float32), ((0, l_pad - L), (0, 0)))
    right_p = jnp.pad(right_h.astype(jnp.float32), ((0, r_pad - R), (0, 0)))
    w32 = weights.astype(jnp.float32)

    # Normalize each head once; fold 1/H average into the left operand.
    a = _normalize_pack(left_p, w32, k_pad, scale=1.0 / H, row_tile=tm)   # (l_pad, k_pad)
    b = _normalize_pack(right_p, w32, k_pad, scale=1.0, row_tile=tn)      # (r_pad, k_pad)

    kernel = functools.partial(_cosine_matmul_kernel, threshold=float(threshold))
    cost = pl.CostEstimate(
        flops=2 * l_pad * r_pad * k_pad,
        transcendentals=0,
        bytes_accessed=4 * (l_pad * k_pad + r_pad * k_pad + l_pad * r_pad))

    s = pl.pallas_call(
        kernel,
        out_shape=jax.ShapeDtypeStruct((l_pad, r_pad), jnp.float32),
        grid_spec=pltpu.PrefetchScalarGridSpec(
            num_scalar_prefetch=0,
            grid=(l_pad // tm, r_pad // tn, k_pad // tk),
            in_specs=[
                pl.BlockSpec((tm, tk), lambda i, j, k: (i, k)),
                pl.BlockSpec((tn, tk), lambda i, j, k: (j, k)),
            ],
            out_specs=pl.BlockSpec((tm, tn), lambda i, j, k: (i, j)),
        ),
        compiler_params=pltpu.CompilerParams(
            dimension_semantics=("parallel", "parallel", "arbitrary"),
            vmem_limit_bytes=32 * 1024 * 1024),
        cost_estimate=cost,
    )(a, b)

    s = s[:L, :R]

    # Early-return branch (sum(left)==0 or sum(right)==0 -> zeros), as a mask.
    nonzero = jnp.logical_and(jnp.sum(left_h) != 0, jnp.sum(right_h) != 0)
    return s * nonzero.astype(s.dtype)


def _reference_forward(left_h, right_h, weights, threshold=0.1):
    """Pure-JAX reference mirroring the PyTorch module."""
    H = weights.shape[0]
    row_sum = jnp.sum(left_h, axis=1, keepdims=True)
    lh = left_h + jnp.where(row_sum == 0, 1e-8, 0.0)
    s = jnp.zeros((left_h.shape[0], right_h.shape[0]), jnp.float32)
    for i in range(H):
        wl = lh * weights[i][None, :]
        wr = right_h * weights[i][None, :]
        ln = jnp.maximum(jnp.linalg.norm(wl, axis=1, keepdims=True), 1e-8)
        rn = jnp.maximum(jnp.linalg.norm(wr, axis=1, keepdims=True), 1e-8)
        s = s + (wl / ln) @ (wr / rn).T
    s = s / H
    s = jnp.where(s < threshold, 0.0, s)
    nonzero = jnp.logical_and(jnp.sum(left_h) != 0, jnp.sum(right_h) != 0)
    return s * nonzero.astype(s.dtype)


if __name__ == "__main__":
    key = jax.random.PRNGKey(0)
    k_l, k_r, k_w = jax.random.split(key, 3)

    L, R, D, H = 48, 40, 32, 2   # non-multiples to exercise the padding path
    threshold = 0.1

    left_h = jax.random.normal(k_l, (L, D), dtype=jnp.float32)
    right_h = jax.random.normal(k_r, (R, D), dtype=jnp.float32)

    # Deterministic xavier_uniform-style init for each head's [1, D] weight.
    bound = math.sqrt(6.0 / (1 + D))
    weights = jax.random.uniform(
        k_w, (H, D), dtype=jnp.float32, minval=-bound, maxval=bound)

    out = graph_generator_forward(left_h, right_h, weights, threshold)
    out = jax.block_until_ready(out)

    ref = _reference_forward(left_h, right_h, weights, threshold)
    assert out.shape == (L, R)
    assert jnp.allclose(out, ref, atol=1e-5, rtol=1e-5), "mismatch vs reference"

    print("KERNEL_OK")
</pallas_src>

<mosaic_0001>
module attributes {stable_mosaic.version = 11 : i64} {
  func.func @_normalize_pack_kernel(%arg0: i32, %arg1: memref<48x32xf32, #tpu.memory_space<vmem>>, %arg2: memref<2x32xf32, #tpu.memory_space<vmem>>, %arg3: memref<48x128xf32, #tpu.memory_space<vmem>>) attributes {dimension_semantics = [#tpu.dimension_semantics<parallel>], iteration_bounds = array<i64: 1>, scalar_prefetch = 0 : i64, scratch_operands = 0 : i64, tpu.core_type = #tpu.core_type<tc>, window_params = [{transform_indices = @transform_0, window_bounds = array<i64: 48, 32>}, {pipeline_mode = #tpu.pipeline_mode<synchronous>, transform_indices = @transform_1, window_bounds = array<i64: 2, 32>}, {transform_indices = @transform_2, window_bounds = array<i64: 48, 128>}]} {
    %c0 = arith.constant 0 : index
    %c0_0 = arith.constant 0 : index
    %0 = vector.load %arg1[%c0, %c0_0] : memref<48x32xf32, #tpu.memory_space<vmem>>, vector<48x32xf32>
    %c0_1 = arith.constant 0 : index
    %c0_2 = arith.constant 0 : index
    %1 = vector.load %arg2[%c0_1, %c0_2] : memref<2x32xf32, #tpu.memory_space<vmem>>, vector<2x32xf32>
    %cst = arith.constant 0.000000e+00 : f32
    %2 = vector.broadcast %cst : f32 to vector<48x64xf32>
    %c0_3 = arith.constant 0 : index
    %c64 = arith.constant 64 : index
    %3 = vector.load %arg3[%c0_3, %c64] : memref<48x128xf32, #tpu.memory_space<vmem>>, vector<48x64xf32>
    tpu.vector_store %arg3[%c0_3, %c64], %2 {strides = array<i32>} : memref<48x128xf32, #tpu.memory_space<vmem>>, vector<48x64xf32>,
    %4 = vector.extract_strided_slice %1 {offsets = [0, 0], sizes = [1, 32], strides = [1, 1]} : vector<2x32xf32> to vector<1x32xf32>
    %5 = vector.broadcast %4 : vector<1x32xf32> to vector<48x32xf32>
    %6 = arith.mulf %0, %5 : vector<48x32xf32>
    %7 = arith.mulf %6, %6 : vector<48x32xf32>
    %cst_4 = arith.constant dense<0.000000e+00> : vector<48xf32>
    %8 = vector.multi_reduction <add>, %7, %cst_4 [1] : vector<48x32xf32> to vector<48xf32>
    %9 = vector.shape_cast %8 : vector<48xf32> to vector<48x1xf32>
    %10 = math.rsqrt %9 : vector<48x1xf32>
    %cst_5 = arith.constant 1.000000e+08 : f32
    %11 = vector.broadcast %cst_5 : f32 to vector<48x1xf32>
    %12 = arith.minimumf %10, %11 : vector<48x1xf32>
    %cst_6 = arith.constant 5.000000e-01 : f32
    %13 = vector.broadcast %cst_6 : f32 to vector<48x1xf32>
    %14 = arith.mulf %12, %13 : vector<48x1xf32>
    %15 = vector.broadcast %14 : vector<48x1xf32> to vector<48x32xf32>
    %16 = arith.mulf %6, %15 : vector<48x32xf32>
    %c0_7 = arith.constant 0 : index
    %c0_8 = arith.constant 0 : index
    %17 = vector.load %arg3[%c0_7, %c0_8] : memref<48x128xf32, #tpu.memory_space<vmem>>, vector<48x32xf32>
    tpu.vector_store %arg3[%c0_7, %c0_8], %16 {strides = array<i32>} : memref<48x128xf32, #tpu.memory_space<vmem>>, vector<48x32xf32>,
    %18 = vector.extract_strided_slice %1 {offsets = [1, 0], sizes = [1, 32], strides = [1, 1]} : vector<2x32xf32> to vector<1x32xf32>
    %19 = vector.broadcast %18 : vector<1x32xf32> to vector<48x32xf32>
    %20 = arith.mulf %0, %19 : vector<48x32xf32>
    %21 = arith.mulf %20, %20 : vector<48x32xf32>
    %cst_9 = arith.constant dense<0.000000e+00> : vector<48xf32>
    %22 = vector.multi_reduction <add>, %21, %cst_9 [1] : vector<48x32xf32> to vector<48xf32>
    %23 = vector.shape_cast %22 : vector<48xf32> to vector<48x1xf32>
    %24 = math.rsqrt %23 : vector<48x1xf32>
    %cst_10 = arith.constant 1.000000e+08 : f32
    %25 = vector.broadcast %cst_10 : f32 to vector<48x1xf32>
    %26 = arith.minimumf %24, %25 : vector<48x1xf32>
    %cst_11 = arith.constant 5.000000e-01 : f32
    %27 = vector.broadcast %cst_11 : f32 to vector<48x1xf32>
    %28 = arith.mulf %26, %27 : vector<48x1xf32>
    %29 = vector.broadcast %28 : vector<48x1xf32> to vector<48x32xf32>
    %30 = arith.mulf %20, %29 : vector<48x32xf32>
    %c0_12 = arith.constant 0 : index
    %c32 = arith.constant 32 : index
    %31 = vector.load %arg3[%c0_12, %c32] : memref<48x128xf32, #tpu.memory_space<vmem>>, vector<48x32xf32>
    tpu.vector_store %arg3[%c0_12, %c32], %30 {strides = array<i32>} : memref<48x128xf32, #tpu.memory_space<vmem>>, vector<48x32xf32>,
    return
  }
  func.func @transform_0(%arg0: i32) -> (i32, i32) {
    %c0_i32 = arith.constant 0 : i32
    %c0_i32_0 = arith.constant 0 : i32
    return %arg0, %c0_i32 : i32, i32
  }
  func.func @transform_1(%arg0: i32) -> (i32, i32) {
    %c0_i32 = arith.constant 0 : i32
    %c0_i32_0 = arith.constant 0 : i32
    %c0_i32_1 = arith.constant 0 : i32
    return %c0_i32, %c0_i32_0 : i32, i32
  }
  func.func @transform_2(%arg0: i32) -> (i32, i32) {
    %c0_i32 = arith.constant 0 : i32
    %c0_i32_0 = arith.constant 0 : i32
    return %arg0, %c0_i32 : i32, i32
  }
}

</mosaic_0001>

<bundles_post_ra>
// kernel: tpu_custom_call.1
= control target key start
LH: loop header
LB: loop body
LE: loop exit
PB: predicated region body
PF: predicated region fallthrough
CT: control target
= control target key end

     0   :  { %v26_v0 = vlaneseq  ;;  %s386_s0 = inlined_call_operand.vmem [shape: f32[48,32], index: 0, kind: input, shape index: {}]   ;;  %s387_s1 = inlined_call_operand.vmem [shape: f32[2,32], index: 1, kind: input, shape index: {}]   ;;  %s388_s2 = inlined_call_operand.hbm [shape: f32[48,128], index: 2, kind: output, shape index: {}]  }
   0x2   :  { %v27_v1 = vshrl.u32 %v26_v0, 7 }
   0x3   :  { %7 = vsyncpa [#allocation3], 0  ;;  %v18_v2 = vld [vmem:[%s387_s1] sm:$0x3]  ;;  %v13_v5 = vld [vmem:[%s386_s0 + $0x8] sm:$0xff]  ;;  %vm42_vm0 = vcmask 261120  }
   0x4   :  { %v12_v3 = vld [vmem:[%s386_s0] sm:$0xff]  ;;  %v93_v4 = vsub.s32 1, %v27_v1  ;;  %v14_v6 = vld [vmem:[%s386_s0 + $0x10] sm:$0xff]  ;;  %v15_v7 = vld [vmem:[%s386_s0 + $0x18] sm:$0xff]  ;;  %v28_v8 = vsub.s32 0, %v27_v1  ;;  %vm19_vm1 = vcmask 1048064  }
   0x5   :  { %v17_v10 = vld [vmem:[%s386_s0 + $0x28] sm:$0xff]  ;;  %v16_v11 = vld [vmem:[%s386_s0 + $0x20] sm:$0xff]  ;;  %v249_v49 = vmov 0.0   ;;  %s250_s0 = smov 32   ;;  %vm173_vm2 = vcmask 523520   ;;  %s251_s22 = smov [#allocation2]  }
   0x6   :  { %v94_v9 = vrot.slane %v18_v2, %v93_v4  ;;  %v29_v18 = vrot.slane %v18_v2, %v28_v8  ;;  %20 = vst.msk [vmem:[#allocation2] sm:$0xff] %vm19_vm1, %v249_v49  ;;  %21 = vst.msk [vmem:[#allocation2 + $0x8] sm:$0xff] %vm19_vm1, %v249_v49  ;;  %s185_s23 = sshll.u32 %s251_s22, 4  ;;  %s186_s23 = int_to_ptr.vmem [resolvable:$true] %s185_s23 }
   0x7   :  { %22 = vst.msk [vmem:[#allocation2 + $0x10] sm:$0xff] %vm19_vm1, %v249_v49  ;;  %23 = vst.msk [vmem:[#allocation2 + $0x18] sm:$0xff] %vm19_vm1, %v249_v49  ;;  %s225_s24 = scalar_lea.vmem %s186_s23, 768  ;;  %p230_p1 = scmp.lt.s32.totalorder %s186_s23, %s186_s23 }
   0x8   :  { %v290_v12 = vmul.f32 %v94_v9, %v12_v3  ;;  %v292_v13 = vmul.f32 %v94_v9, %v13_v5  ;;  %v294_v14 = vmul.f32 %v94_v9, %v14_v6  ;;  %v296_v15 = vmul.f32 %v94_v9, %v15_v7  ;;  %24 = vst.msk [vmem:[#allocation2 + $0x20] sm:$0xff] %vm19_vm1, %v249_v49  ;;  %p226_p0 = scmp.ne.s32.totalorder %s186_s23, %s225_s24  ;;  %p231_p2 = scmp.lt.s32.totalorder %s225_s24, %s225_s24 }
   0x9   :  { %v298_v16 = vmul.f32 %v94_v9, %v17_v10  ;;  %v300_v17 = vmul.f32 %v94_v9, %v16_v11  ;;  %v312_v25 = vmul.f32 %v29_v18, %v12_v3  ;;  %v314_v26 = vmul.f32 %v29_v18, %v13_v5  ;;  %25 = vst.msk [vmem:[#allocation2 + $0x28] sm:$0xff] %vm19_vm1, %v249_v49 }
   0xa   :  { %v101_v19 = vmul.f32 %v290_v12, %v290_v12  ;;  %v102_v20 = vmul.f32 %v292_v13, %v292_v13  ;;  %v103_v21 = vmul.f32 %v294_v14, %v294_v14  ;;  %v104_v22 = vmul.f32 %v296_v15, %v296_v15  ;;  %p232_p3 = por %p231_p2, %p230_p1 }
   0xb   :  { %v106_v29 = vmul.f32 %v298_v16, %v298_v16  ;;  %v105_v30 = vmul.f32 %v300_v17, %v300_v17  ;;  %v36_v31 = vmul.f32 %v312_v25, %v312_v25  ;;  %v37_v32 = vmul.f32 %v314_v26, %v314_v26 }
   0xc   :  { %v107_v23 = vsel %vm42_vm0, %v101_v19, 0.0  ;;  %v113_v24 = vsel %vm42_vm0, %v103_v21, 0.0  ;;  %v110_v27 = vsel %vm42_vm0, %v102_v20, 0.0  ;;  %v116_v28 = vsel %vm42_vm0, %v104_v22, 0.0  ;;  %p233_p4 = pnand %p232_p3, %p226_p0 }
   0xd   :  { %108 = vadd.xlane.f32.xlu0 %v107_v23  ;;  %114 = vadd.xlane.f32.xlu1 %v113_v24  ;;  %v122_v33 = vsel %vm42_vm0, %v106_v29, 0.0  ;;  %v119_v34 = vsel %vm42_vm0, %v105_v30, 0.0  ;;  %v328_v35 = vmul.f32 %v29_v18, %v14_v6  ;;  %v330_v36 = vmul.f32 %v29_v18, %v15_v7 }
   0xe   :  { %v43_v37 = vsel %vm42_vm0, %v36_v31, 0.0  ;;  %v46_v38 = vsel %vm42_vm0, %v37_v32, 0.0  ;;  %v338_v41 = vmul.f32 %v29_v18, %v16_v11  ;;  %v340_v42 = vmul.f32 %v29_v18, %v17_v10 }
   0xf   :  { %v38_v39 = vmul.f32 %v328_v35, %v328_v35  ;;  %v39_v40 = vmul.f32 %v330_v36, %v330_v36 }
  0x10   :  { %v40_v45 = vmul.f32 %v338_v41, %v338_v41  ;;  %v41_v46 = vmul.f32 %v340_v42, %v340_v42 }
  0x11   :  { %111 = vadd.xlane.f32.xlu0 %v110_v27  ;;  %117 = vadd.xlane.f32.xlu1 %v116_v28  ;;  %v49_v43 = vsel %vm42_vm0, %v38_v39, 0.0  ;;  %v52_v44 = vsel %vm42_vm0, %v39_v40, 0.0 }
  0x12   :  { %v55_v47 = vsel %vm42_vm0, %v40_v45, 0.0  ;;  %v58_v48 = vsel %vm42_vm0, %v41_v46, 0.0 }
  0x15   :  { %123 = vadd.xlane.f32.xlu1 %v122_v33  ;;  %120 = vadd.xlane.f32.xlu0 %v119_v34 }
  0x19   :  { %44 = vadd.xlane.f32.xlu0 %v43_v37  ;;  %47 = vadd.xlane.f32.xlu1 %v46_v38 }
  0x1d   :  { %50 = vadd.xlane.f32.xlu0 %v49_v43  ;;  %53 = vadd.xlane.f32.xlu1 %v52_v44 }
  0x21   :  { %56 = vadd.xlane.f32.xlu0 %v55_v47  ;;  %59 = vadd.xlane.f32.xlu1 %v58_v48 }
  0x9a   :  { %v109_v50 = vpop.xlane.xlu0 %108  ;;  %v115_v51 = vpop.xlane.xlu1 %114 }
  0x9b   :  { %201 = vrsqrt.f32 %v109_v50 }
  0x9c   :  { %203 = vrsqrt.f32 %v115_v51 }
  0x9e   :  { %v112_v52 = vpop.xlane.xlu0 %111  ;;  %v118_v53 = vpop.xlane.xlu1 %117 }
  0x9f   :  { %205 = vrsqrt.f32 %v112_v52 }
  0xa0   :  { %207 = vrsqrt.f32 %v118_v53 }
  0xa2   :  { %v124_v54 = vpop.xlane.xlu1 %123  ;;  %v121_v55 = vpop.xlane.xlu0 %120 }
  0xa3   :  { %209 = vrsqrt.f32 %v124_v54 }
  0xa4   :  { %211 = vrsqrt.f32 %v121_v55 }
  0xa5   :  { %v202_v56 = vpop.eup %201 }
  0xa6   :  { %v204_v57 = vpop.eup %203  ;;  %v131_v58 = vmin.f32 %v202_v56, 1e+08  ;;  %v45_v59 = vpop.xlane.xlu0 %44 }
  0xa7   :  { %v48_v60 = vpop.xlane.xlu1 %47  ;;  %213 = vrsqrt.f32 %v45_v59  ;;  %v133_v62 = vmin.f32 %v204_v57, 1e+08 }
  0xa8   :  { %v137_v61 = vmul.f32 0.5, %v131_v58  ;;  %215 = vrsqrt.f32 %v48_v60 }
  0xa9   :  { %v206_v63 = vpop.eup %205  ;;  %v139_v6 = vmul.f32 0.5, %v133_v62 }
  0xaa   :  { %v208_v0 = vpop.eup %207  ;;  %v132_v1 = vmin.f32 %v206_v63, 1e+08  ;;  %v143_v2 = vmul.f32 %v137_v61, %v290_v12  ;;  %v51_v3 = vpop.xlane.xlu0 %50 }
  0xab   :  { %v54_v4 = vpop.xlane.xlu1 %53  ;;  %217 = vrsqrt.f32 %v51_v3  ;;  %v134_v7 = vmin.f32 %v208_v0, 1e+08  ;;  %v145_v21 = vmul.f32 %v139_v6, %v294_v14 }
  0xac   :  { %v138_v5 = vmul.f32 0.5, %v132_v1  ;;  %155 = vrot.lane.b32.xlu0 %v143_v2, %s250_s0  ;;  %219 = vrsqrt.f32 %v54_v4 }
  0xad   :  { %v210_v8 = vpop.eup %209  ;;  %v140_v20 = vmul.f32 0.5, %v134_v7 }
  0xae   :  { %v212_v9 = vpop.eup %211  ;;  %v144_v10 = vmul.f32 %v138_v5, %v292_v13  ;;  %v57_v11 = vpop.xlane.xlu0 %56  ;;  %v136_v12 = vmin.f32 %v210_v8, 1e+08 }
  0xaf   :  { %v60_v18 = vpop.xlane.xlu1 %59  ;;  %v135_v19 = vmin.f32 %v212_v9, 1e+08  ;;  %221 = vrsqrt.f32 %v57_v11  ;;  %v146_v13 = vmul.f32 %v140_v20, %v296_v15 }
  0xb0   :  { %157 = vrot.lane.b32.xlu1 %v144_v10, %s250_s0  ;;  %223 = vrsqrt.f32 %v60_v18  ;;  %v142_v30 = vmul.f32 0.5, %v136_v12 }
  0xb1   :  { %v214_v22 = vpop.eup %213  ;;  %v141_v23 = vmul.f32 0.5, %v135_v19 }
  0xb2   :  { %v216_v24 = vpop.eup %215  ;;  %v67_v27 = vmin.f32 %v214_v22, 1e+08 }
  0xb3   :  { %v147_v28 = vmul.f32 %v141_v23, %v300_v17  ;;  %v68_v29 = vmin.f32 %v216_v24, 1e+08  ;;  %v148_v17 = vmul.f32 %v142_v30, %v298_v16 }
  0xb4   :  { %159 = vrot.lane.b32.xlu1 %v145_v21, %s250_s0  ;;  %v73_v31 = vmul.f32 0.5, %v67_v27 }
  0xb5   :  { %v218_v32 = vpop.eup %217  ;;  %163 = vrot.lane.b32.xlu0 %v147_v28, %s250_s0  ;;  %v74_v33 = vmul.f32 0.5, %v68_v29 }
  0xb6   :  { %v220_v34 = vpop.eup %219  ;;  %v79_v14 = vmul.f32 %v73_v31, %v312_v25  ;;  %v69_v37 = vmin.f32 %v218_v32, 1e+08 }
  0xb7   :  { %v80_v38 = vmul.f32 %v74_v33, %v314_v26  ;;  %v70_v39 = vmin.f32 %v220_v34, 1e+08 }
  0xb8   :  { %161 = vrot.lane.b32.xlu1 %v146_v13, %s250_s0  ;;  %v75_v40 = vmul.f32 0.5, %v69_v37  ;;  %85 = vst.msk [vmem:[#allocation2] sm:$0xff] %vm42_vm0, %v79_v14 }
  0xb9   :  { %v222_v15 = vpop.eup %221  ;;  %v76_v43 = vmul.f32 0.5, %v70_v39  ;;  %86 = vst.msk [vmem:[#allocation2 + $0x8] sm:$0xff] %vm42_vm0, %v80_v38 }
  0xba   :  { %v224_v44 = vpop.eup %223  ;;  %v81_v45 = vmul.f32 %v75_v40, %v328_v35  ;;  %v71_v46 = vmin.f32 %v222_v15, 1e+08 }
  0xbb   :  { %v82_v25 = vmul.f32 %v76_v43, %v330_v36  ;;  %v72_v47 = vmin.f32 %v224_v44, 1e+08 }
  0xbc   :  { %165 = vrot.lane.b32.xlu1 %v148_v17, %s250_s0  ;;  %v77_v26 = vmul.f32 0.5, %v71_v46  ;;  %87 = vst.msk [vmem:[#allocation2 + $0x10] sm:$0xff] %vm42_vm0, %v81_v45 }
  0xbd   :  { %v78_v16 = vmul.f32 0.5, %v72_v47  ;;  %88 = vst.msk [vmem:[#allocation2 + $0x18] sm:$0xff] %vm42_vm0, %v82_v25 }
  0xbe   :  { %v83_v48 = vmul.f32 %v77_v26, %v338_v41 }
  0xbf   :  { %v84_v49 = vmul.f32 %v78_v16, %v340_v42 }
  0xc0   :  { %89 = vst.msk [vmem:[#allocation2 + $0x20] sm:$0xff] %vm42_vm0, %v83_v48 }
  0xc1   :  { %90 = vst.msk [vmem:[#allocation2 + $0x28] sm:$0xff] %vm42_vm0, %v84_v49 }
 0x11e   :  { %v156_v35 = vpop.permute.xlu0 %155 }
 0x11f   :  { %174 = vst.msk [vmem:[#allocation2] sm:$0xff] %vm173_vm2, %v156_v35 }
 0x122   :  { %v158_v36 = vpop.permute.xlu1 %157 }
 0x123   :  { %175 = vst.msk [vmem:[#allocation2 + $0x8] sm:$0xff] %vm173_vm2, %v158_v36 }
 0x126   :  { %v160_v50 = vpop.permute.xlu1 %159 }
 0x127   :  { %176 = vst.msk [vmem:[#allocation2 + $0x10] sm:$0xff] %vm173_vm2, %v160_v50  ;;  %v164_v51 = vpop.permute.xlu0 %163 }
 0x128   :  { %178 = vst.msk [vmem:[#allocation2 + $0x20] sm:$0xff] %vm173_vm2, %v164_v51 }
 0x12a   :  { %v162_v52 = vpop.permute.xlu1 %161 }
 0x12b   :  { %177 = vst.msk [vmem:[#allocation2 + $0x18] sm:$0xff] %vm173_vm2, %v162_v52 }
 0x12e   :  { %v166_v41 = vpop.permute.xlu1 %165 }
 0x12f   :  { %179 = vst.msk [vmem:[#allocation2 + $0x28] sm:$0xff] %vm173_vm2, %v166_v41 }
 0x130   :  { %236 = shalt.err (!%p233_p4)
}
 0x131   :  { %s237_s27 = scalar_lea.hbm %s388_s2, 768 }
 0x132   :  { %p238_p5 = scmp.ne.s32.totalorder %s388_s2, %s237_s27  ;;  %p241_p6 = scmp.lt.u32.totalorder %s237_s27, %s388_s2 }
 0x134   :  { %p243_p7 = pnand %p241_p6, %p238_p5 }
 0x136   :  { %246 = shalt.err (!%p243_p7)
}
 0x137   :  { %s252_s4 = smov 128   ;;  %s253_s5 = smov 8  }
 0x138   :  { %191 = dma.vmem_to_hbm [thread:$0]  %s186_s23, 768, %s388_s2, [#allocation3], %s252_s4, %s252_s4, %s253_s5  }
 0x139   :  { %247 = dma.done.wait [#allocation3], 768  }
 0x13a   :  { %248 = vsyncadd [#allocation3], 4294966528 }
 0x13b   :  { %195 = vsyncpa [#allocation3], 1 }

</bundles_post_ra>
